<compile_context>
chip_gen: v5e
topology: v5e:2x2
jax: 0.10.0
libtpu: 0.0.40
codegen_flags: <defaults>
</compile_context>

<pallas_src>
import jax
import jax.numpy as jnp
from jax.experimental import pallas as pl
from jax.experimental.pallas import tpu as pltpu

# Cl(1,3) multivector: 16 blades, grade of each blade index.
_BLADE_GRADE = jnp.array([0, 1, 1, 1, 1, 2, 2, 2, 2, 2, 2, 3, 3, 3, 3, 4], dtype=jnp.int32)


def _round_up(a, b):
    return ((a + b - 1) // b) * b


# ----------------------------- Pallas kernel --------------------------------
def amplitude_kernel(xT_ref, wxT_ref, mask_ref, woutT_ref, out_ref):
    # Fused input matmul, transposed: h^T = W_x^T @ x^T  -> (C+S, TB), items on lanes.
    h = jnp.dot(wxT_ref[...], xT_ref[...], preferred_element_type=jnp.float32)
    gh = jax.nn.gelu(h)
    m = mask_ref[...]                                   # (C+S, 1), broadcast along lanes
    # mv channels (mask=1): scalar-gated GELU  h * gelu(h)
    # scalar channels (mask=0): plain GELU     gelu(h)
    act = gh * (h * m + (1.0 - m))                      # (C+S, TB)
    # blade-0 (Lorentz scalar) per item, lane-dense (1, TB) row
    out_ref[...] = jnp.dot(woutT_ref[...], act, preferred_element_type=jnp.float32)


# ------------------------------- parameters ----------------------------------
def init_params(token_size, mv_hidden=16, s_hidden=32, seed=42):
    """Synthetic GATr-like net weights in their 'original' (unfused) form."""
    C, S, T = mv_hidden, s_hidden, token_size
    ks = jax.random.split(jax.random.PRNGKey(seed), 6)
    w1_grade = jax.random.normal(ks[0], (5, C), jnp.float32) * 0.3
    w2_grade = jax.random.normal(ks[1], (5, C), jnp.float32) * 0.3
    w1b = w1_grade[_BLADE_GRADE]                                   # (16, C) per-blade weights
    w2b = w2_grade[_BLADE_GRADE]                                   # (16, C)
    emb = jnp.zeros((4, 16), jnp.float32).at[jnp.arange(4), jnp.arange(1, 5)].set(1.0)
    return dict(
        emb=emb,                                                   # (4, 16) embed_vector matrix
        w1bT=jnp.transpose(w1b),                                   # (C, 16)
        w1sm=jax.random.normal(ks[2], (T, C), jnp.float32) * 0.3,  # scalars -> mv scalar blade
        w1ss=jax.random.normal(ks[3], (T, S), jnp.float32) * 0.3,  # scalars -> scalars
        w1ms=jax.random.normal(ks[4], (1, S), jnp.float32) * 0.3,  # mv blade 0 -> scalars
        w2bT=jnp.transpose(w2b),                                   # (C, 16)
        w2smT=jax.random.normal(ks[5], (1, S), jnp.float32) * 0.3, # scalars -> output blade 0
    )


def pack_params(params):
    """Fold embed_vector + both EquiLinears into blade-0-only fused weights (see header)."""
    emb0 = params["emb"][:, 0:1]                                   # (4, 1)  p -> mv blade 0
    w1bT = params["w1bT"]                                          # (C, 16)
    C = w1bT.shape[0]
    S = params["w1ss"].shape[1]
    # gate pre-activation columns (mv channels)
    wg_p = emb0 @ w1bT[:, 0:1].T                                   # (4, C)  (identically zero emb0)
    wg_s = params["w1sm"]                                          # (T, C)
    # scalar pre-activation columns
    ws_p = emb0 @ params["w1ms"]                                   # (4, S)
    ws_s = params["w1ss"]                                          # (T, S)
    wx = jnp.concatenate([jnp.concatenate([wg_p, ws_p], axis=1),
                          jnp.concatenate([wg_s, ws_s], axis=1)], axis=0)       # (4+T, C+S)
    w_out = jnp.concatenate([params["w2bT"][:, 0], params["w2smT"][0, :]])[:, None]  # (C+S, 1)
    gate_mask = jnp.concatenate([jnp.ones((1, C), jnp.float32),
                                 jnp.zeros((1, S), jnp.float32)], axis=1)       # (1, C+S)
    return dict(wx=wx, w_out=w_out, gate_mask=gate_mask)


# ------------------------------- glue (JAX) ----------------------------------
def prepare_inputs(inputs, type_token, global_token, token_size):
    """encode_tokens (isgatr=True) + global-token prepending + row flattening + feature fuse."""
    B, N, _ = inputs.shape
    Np1 = N + 1
    tt = jnp.asarray(type_token, jnp.int32).reshape(-1)
    type_onehot = jax.nn.one_hot(tt, token_size, dtype=jnp.float32)             # (N, T)
    type_onehot = jnp.broadcast_to(type_onehot[None], (B, N, token_size))
    g_onehot = jax.nn.one_hot(jnp.asarray(global_token, jnp.int32), token_size,
                              dtype=jnp.float32)
    g_onehot = jnp.broadcast_to(g_onehot[None, None, :], (B, 1, token_size))
    scalars = jnp.concatenate([g_onehot, type_onehot], axis=1)                  # (B, Np1, T)
    # global-token multivector is all zeros == embed_vector(zero 4-momentum)
    p_full = jnp.concatenate([jnp.zeros((B, 1, 4), jnp.float32),
                              inputs.astype(jnp.float32)], axis=1)              # (B, Np1, 4)
    M = B * Np1
    x = jnp.concatenate([p_full.reshape(M, 4), scalars.reshape(M, token_size)], axis=-1)
    return x, M, Np1


def amplitude_gatr_forward(params, inputs, type_token, global_token, token_size,
                           compute_dtype=jnp.bfloat16, row_tile=512):
    B = inputs.shape[0]
    x, M, Np1 = prepare_inputs(inputs, type_token, global_token, token_size)
    packed = pack_params(params)
    Kin = x.shape[1]                      # 4 + token_size
    CS = packed["wx"].shape[1]            # C + S

    # Items are the lane axis -> tile must be a multiple of 128; pad M up to the tile.
    TB = max(128, min(_round_up(row_tile, 128), _round_up(M, 128)))
    M_pad = _round_up(M, TB)
    if M_pad > M:
        x = jnp.concatenate([x, jnp.zeros((M_pad - M, Kin), x.dtype)], axis=0)

    # Wrapper-side transposes: layout plumbing so the kernel sees lane-dense slabs.
    xT = x.T.astype(compute_dtype)                         # (Kin, M_pad)  streaming
    wxT = packed["wx"].T.astype(compute_dtype)             # (CS, Kin)     resident
    gate_mask = packed["gate_mask"].T.astype(jnp.float32)  # (CS, 1)       resident
    w_outT = packed["w_out"].T.astype(jnp.float32)         # (1, CS)       resident

    itemsize = jnp.dtype(compute_dtype).itemsize
    per_tile = 2 * (Kin * TB * itemsize + TB * 4)          # double-buffered in/out stream
    resident = wxT.size * itemsize + (w_outT.size + gate_mask.size) * 4
    intermediates = 2 * CS * TB * 4                        # h + act in f32
    vmem_limit = int(min(32 << 20, max(8 << 20, 4 * (per_tile + resident + intermediates))))

    grid = (M_pad // TB,)
    lorentz = pl.pallas_call(
        amplitude_kernel,
        out_shape=jax.ShapeDtypeStruct((1, M_pad), jnp.float32),
        grid=grid,
        in_specs=[
            pl.BlockSpec((Kin, TB), lambda i: (0, i)),     # streaming items (lane-dense)
            pl.BlockSpec((CS, Kin), lambda i: (0, 0)),     # fused input weights (resident)
            pl.BlockSpec((CS, 1), lambda i: (0, 0)),       # gate mask (resident)
            pl.BlockSpec((1, CS), lambda i: (0, 0)),       # fused output weights (resident)
        ],
        out_specs=pl.BlockSpec((1, TB), lambda i: (0, i)), # lane-dense output row
        compiler_params=pltpu.CompilerParams(
            dimension_semantics=("parallel",),
            vmem_limit_bytes=vmem_limit),
    )(xT, wxT, gate_mask, w_outT)

    # extract_from_ga: blade-0 Lorentz scalar of the global token (item 0 of each event)
    return lorentz[0, :M].reshape(B, Np1)[:, 0:1]


# ------------------------- pure-JAX reference check --------------------------
def reference_forward(params, inputs, type_token, global_token, token_size):
    """Original (unfused, rank-3) formulation of the synthetic GATr forward."""
    B = inputs.shape[0]
    x, M, Np1 = prepare_inputs(inputs, type_token, global_token, token_size)
    p2, s2 = x[:, :4], x[:, 4:]
    mv_in = p2 @ params["emb"]
    blade0 = (jnp.arange(16) == 0).astype(jnp.float32)
    h_mv = mv_in[:, None, :] * params["w1bT"][None]
    s2mv = s2 @ params["w1sm"]
    h_mv = h_mv + s2mv[:, :, None] * blade0[None, None, :]
    h_s = s2 @ params["w1ss"] + mv_in[:, 0:1] * params["w1ms"]
    h_mv = h_mv * jax.nn.gelu(h_mv[:, :, 0:1])
    h_s = jax.nn.gelu(h_s)
    mv_out = jnp.sum(h_mv * params["w2bT"][None], axis=1)
    s_out = jnp.sum(h_s * params["w2smT"], axis=1, keepdims=True)
    lorentz = mv_out[:, 0:1] + s_out
    return lorentz.reshape(B, Np1)[:, 0:1]


if __name__ == "__main__":
    B, N, TOKEN_SIZE = 2, 8, 8
    key = jax.random.PRNGKey(0)
    inputs = jax.random.normal(key, (B, N, 4), jnp.float32)   # (batch, particles, 4-momentum)
    type_token = [0, 0, 1, 1, 2, 2, 3, 3]
    global_token = 0

    params = init_params(TOKEN_SIZE)
    ref = reference_forward(params, inputs, type_token, global_token, TOKEN_SIZE)

    # f32 streaming operands: tight check against the original rank-3 formulation.
    amp_f32 = amplitude_gatr_forward(params, inputs, type_token, global_token,
                                     TOKEN_SIZE, compute_dtype=jnp.float32)
    amp_f32 = jax.block_until_ready(amp_f32)
    assert amp_f32.shape == (B, 1), amp_f32.shape
    assert jnp.allclose(amp_f32, ref, atol=1e-4, rtol=1e-4), (amp_f32, ref)

    # bf16 streaming operands (v6e/v7x bandwidth path), f32 MXU accumulation.
    amp_bf16 = amplitude_gatr_forward(params, inputs, type_token, global_token,
                                      TOKEN_SIZE, compute_dtype=jnp.bfloat16)
    amp_bf16 = jax.block_until_ready(amp_bf16)
    assert amp_bf16.shape == (B, 1), amp_bf16.shape
    assert jnp.allclose(amp_bf16, ref, atol=5e-2, rtol=5e-2), (amp_bf16, ref)

    print("KERNEL_OK")
</pallas_src>

<mosaic_0001>
module attributes {stable_mosaic.version = 11 : i64} {
  func.func @amplitude_kernel(%arg0: i32, %arg1: memref<12x128xf32, #tpu.memory_space<vmem>>, %arg2: memref<48x12xf32, #tpu.memory_space<vmem>>, %arg3: memref<48x1xf32, #tpu.memory_space<vmem>>, %arg4: memref<1x48xf32, #tpu.memory_space<vmem>>, %arg5: memref<1x128xf32, #tpu.memory_space<vmem>>) attributes {dimension_semantics = [#tpu.dimension_semantics<parallel>], iteration_bounds = array<i64: 1>, scalar_prefetch = 0 : i64, scratch_operands = 0 : i64, tpu.core_type = #tpu.core_type<tc>, window_params = [{transform_indices = @transform_0, window_bounds = array<i64: 12, 128>}, {pipeline_mode = #tpu.pipeline_mode<synchronous>, transform_indices = @transform_1, window_bounds = array<i64: 48, 12>}, {pipeline_mode = #tpu.pipeline_mode<synchronous>, transform_indices = @transform_2, window_bounds = array<i64: 48, 1>}, {pipeline_mode = #tpu.pipeline_mode<synchronous>, transform_indices = @transform_3, window_bounds = array<i64: 1, 48>}, {transform_indices = @transform_4, window_bounds = array<i64: 1, 128>}]} {
    %c0 = arith.constant 0 : index
    %c0_0 = arith.constant 0 : index
    %0 = vector.load %arg2[%c0, %c0_0] : memref<48x12xf32, #tpu.memory_space<vmem>>, vector<48x12xf32>
    %c0_1 = arith.constant 0 : index
    %c0_2 = arith.constant 0 : index
    %1 = vector.load %arg1[%c0_1, %c0_2] : memref<12x128xf32, #tpu.memory_space<vmem>>, vector<12x128xf32>
    %cst = arith.constant dense<0.000000e+00> : vector<48x128xf32>
    %2 = tpu.matmul %0, %1, %cst {dimension_numbers = #tpu.dot_dimension_numbers<[1], [0], [0], [1], [0, 0, 1, 1], [], []>} : vector<48x12xf32>, vector<12x128xf32>, vector<48x128xf32> -> vector<48x128xf32>
    %3 = arith.mulf %2, %2 : vector<48x128xf32>
    %4 = arith.mulf %2, %3 : vector<48x128xf32>
    %cst_3 = arith.constant 4.471500e-02 : f32
    %5 = vector.broadcast %cst_3 : f32 to vector<48x128xf32>
    %6 = arith.mulf %5, %4 : vector<48x128xf32>
    %7 = arith.addf %2, %6 : vector<48x128xf32>
    %cst_4 = arith.constant 0.797884583 : f32
    %8 = vector.broadcast %cst_4 : f32 to vector<48x128xf32>
    %9 = arith.mulf %8, %7 : vector<48x128xf32>
    %10 = math.tanh %9 : vector<48x128xf32>
    %cst_5 = arith.constant 1.000000e+00 : f32
    %11 = vector.broadcast %cst_5 : f32 to vector<48x128xf32>
    %12 = arith.addf %11, %10 : vector<48x128xf32>
    %cst_6 = arith.constant 5.000000e-01 : f32
    %13 = vector.broadcast %cst_6 : f32 to vector<48x128xf32>
    %14 = arith.mulf %13, %12 : vector<48x128xf32>
    %15 = arith.mulf %2, %14 : vector<48x128xf32>
    %c0_7 = arith.constant 0 : index
    %c0_8 = arith.constant 0 : index
    %16 = vector.load %arg3[%c0_7, %c0_8] : memref<48x1xf32, #tpu.memory_space<vmem>>, vector<48x1xf32>
    %17 = vector.broadcast %16 : vector<48x1xf32> to vector<48x128xf32>
    %18 = arith.mulf %2, %17 : vector<48x128xf32>
    %cst_9 = arith.constant 1.000000e+00 : f32
    %19 = vector.broadcast %cst_9 : f32 to vector<48x1xf32>
    %20 = arith.subf %19, %16 : vector<48x1xf32>
    %21 = vector.broadcast %20 : vector<48x1xf32> to vector<48x128xf32>
    %22 = arith.addf %18, %21 : vector<48x128xf32>
    %23 = arith.mulf %15, %22 : vector<48x128xf32>
    %c0_10 = arith.constant 0 : index
    %c0_11 = arith.constant 0 : index
    %24 = vector.load %arg4[%c0_10, %c0_11] : memref<1x48xf32, #tpu.memory_space<vmem>>, vector<1x48xf32>
    %cst_12 = arith.constant dense<0.000000e+00> : vector<1x128xf32>
    %25 = tpu.matmul %24, %23, %cst_12 {dimension_numbers = #tpu.dot_dimension_numbers<[1], [0], [0], [1], [0, 0, 1, 1], [], []>} : vector<1x48xf32>, vector<48x128xf32>, vector<1x128xf32> -> vector<1x128xf32>
    %c0_13 = arith.constant 0 : index
    %c0_14 = arith.constant 0 : index
    %26 = vector.load %arg5[%c0_13, %c0_14] : memref<1x128xf32, #tpu.memory_space<vmem>>, vector<1x128xf32>
    tpu.vector_store %arg5[%c0_13, %c0_14], %25 {strides = array<i32>} : memref<1x128xf32, #tpu.memory_space<vmem>>, vector<1x128xf32>,
    return
  }
  func.func @transform_0(%arg0: i32) -> (i32, i32) {
    %c0_i32 = arith.constant 0 : i32
    %c0_i32_0 = arith.constant 0 : i32
    return %c0_i32, %arg0 : i32, i32
  }
  func.func @transform_1(%arg0: i32) -> (i32, i32) {
    %c0_i32 = arith.constant 0 : i32
    %c0_i32_0 = arith.constant 0 : i32
    %c0_i32_1 = arith.constant 0 : i32
    return %c0_i32, %c0_i32_0 : i32, i32
  }
  func.func @transform_2(%arg0: i32) -> (i32, i32) {
    %c0_i32 = arith.constant 0 : i32
    %c0_i32_0 = arith.constant 0 : i32
    %c0_i32_1 = arith.constant 0 : i32
    return %c0_i32, %c0_i32_0 : i32, i32
  }
  func.func @transform_3(%arg0: i32) -> (i32, i32) {
    %c0_i32 = arith.constant 0 : i32
    %c0_i32_0 = arith.constant 0 : i32
    %c0_i32_1 = arith.constant 0 : i32
    return %c0_i32, %c0_i32_0 : i32, i32
  }
  func.func @transform_4(%arg0: i32) -> (i32, i32) {
    %c0_i32 = arith.constant 0 : i32
    %c0_i32_0 = arith.constant 0 : i32
    return %c0_i32, %arg0 : i32, i32
  }
}

</mosaic_0001>

<bundles_post_ra>
// kernel: tpu_custom_call.1
= control target key start
LH: loop header
LB: loop body
LE: loop exit
PB: predicated region body
PF: predicated region fallthrough
CT: control target
= control target key end

     0   :  { %vm45_vm0 = vcmask 1043456   ;;  %vm26_vm1 = vcmask 97280   ;;  %v325_v3 = vmov 0   ;;  %s438_s0 = inlined_call_operand.vmem [shape: f32[12,128], index: 0, kind: input, shape index: {}]   ;;  %s439_s1 = inlined_call_operand.vmem [shape: f32[48,12], index: 1, kind: input, shape index: {}]   ;;  %s440_s2 = inlined_call_operand.vmem [shape: f32[48,1], index: 2, kind: input, shape index: {}]   ;;  %s441_s3 = inlined_call_operand.vmem [shape: f32[1,48], index: 3, kind: input, shape index: {}]   ;;  %s442_s4 = inlined_call_operand.hbm [shape: f32[1,128], index: 4, kind: output, shape index: {}]  }
   0x1   :  { %v25_v0 = vld [vmem:[%s438_s0 + $0x8] sm:$0xf]  ;;  %v24_v1 = vld [vmem:[%s438_s0] sm:$0xff]  ;;  %284 = vset.pattern.permute.xlu0 %v325_v3  ;;  %v20_v4 = vld [vmem:[%s439_s1 + $0x10] sm:$0xff] }
   0x2   :  { %270 = vmatpush.msk.msra.mxu0 %vm45_vm0, %v25_v0  ;;  %278 = vmatpush.msk.msra.mxu2 %vm45_vm0, %v25_v0  ;;  %v18_v2 = vld [vmem:[%s439_s1] sm:$0xff]  ;;  %v143_v6 = vld [vmem:[%s440_s2 + $0x28] sm:$0xff] }
   0x3   :  { %279 = vmatpush.msk.msra.mxu3 %vm45_vm0, %v25_v0  ;;  %v22_v5 = vld [vmem:[%s439_s1 + $0x20] sm:$0xff]  ;;  %v185_v7 = vsub.f32 1.0, %v143_v6 }
   0x4   :  { %64 = vmatpush.msra.mxu0 %v24_v1  ;;  %280 = vmatpush.msra.mxu2 %v24_v1  ;;  %v142_v8 = vld [vmem:[%s440_s2 + $0x20] sm:$0xff] }
   0x5   :  { %281 = vmatpush.msra.mxu3 %v24_v1  ;;  %271 = vmatmul.msk.f32.vlgmr.msra.gmra.mxu0 %vm26_vm1, %v18_v2  ;;  %v184_v9 = vsub.f32 1.0, %v142_v8 }
   0x6   :  { %273 = vmatmul.msk.f32.vlgmr.msra.gmra.mxu2 %vm26_vm1, %v20_v4  ;;  %275 = vmatmul.msk.f32.vlgmr.msra.gmra.mxu3 %vm26_vm1, %v22_v5 }
   0x7   :  { %9 = vsyncpa [#allocation3], 0  ;;  %171 = vperm.xlu0 %284, %v143_v6   ;;  %285 = vset.pattern.permute.xlu1 %v325_v3  ;;  %v19_v10 = vld [vmem:[%s439_s1 + $0x8] sm:$0xff]  ;;  %v21_v11 = vld [vmem:[%s439_s1 + $0x18] sm:$0xff]  ;;  %vm229_vm2 = vcmask 392192   ;;  %s326_s16 = smov [#allocation2]  }
   0x8   :  { %213 = vperm.xlu1 %285, %v185_v7   ;;  %286 = vset.pattern.permute.xlu2 %v325_v3  ;;  %v23_v12 = vld [vmem:[%s439_s1 + $0x28] sm:$0xff]  ;;  %v141_v13 = vld [vmem:[%s440_s2 + $0x18] sm:$0xff]  ;;  %v140_v14 = vld [vmem:[%s440_s2 + $0x10] sm:$0xff]  ;;  %s259_s17 = sshll.u32 %s326_s16, 4  ;;  %s261_s20 = sshll.u32 %s442_s4, 4  ;;  %s260_s17 = int_to_ptr.vmem [resolvable:$true] %s259_s17  ;;  %s262_s20 = int_to_ptr.hbm [resolvable:$true] %s261_s20 }
   0x9   :  { %208 = vperm.xlu2 %286, %v184_v9   ;;  %v183_v15 = vsub.f32 1.0, %v141_v13  ;;  %v139_v16 = vld [vmem:[%s440_s2 + $0x8] sm:$0xff]  ;;  %v182_v17 = vsub.f32 1.0, %v140_v14  ;;  %v138_v19 = vld [vmem:[%s440_s2] sm:$0xff] }
   0xa   :  { %v181_v18 = vsub.f32 1.0, %v139_v16  ;;  %v180_v20 = vsub.f32 1.0, %v138_v19 }
   0xd   :  { %272 = vmatmul.msk.f32.gmra.mxu0 %vm26_vm1, %v19_v10 }
   0xe   :  { %274 = vmatmul.msk.f32.gmra.mxu2 %vm26_vm1, %v21_v11  ;;  %276 = vmatmul.msk.f32.gmra.mxu3 %vm26_vm1, %v23_v12 }
   0xf   :  { %166 = vperm.xlu0 %284, %v142_v8  }
  0x10   :  { %161 = vperm.xlu1 %285, %v141_v13  }
  0x11   :  { %156 = vperm.xlu2 %286, %v140_v14  }
  0x17   :  { %203 = vperm.xlu0 %284, %v183_v15  }
  0x18   :  { %151 = vperm.xlu1 %285, %v139_v16  }
  0x19   :  { %198 = vperm.xlu2 %286, %v182_v17  }
  0x1f   :  { %146 = vperm.xlu0 %284, %v138_v19  }
  0x20   :  { %193 = vperm.xlu1 %285, %v181_v18  }
  0x21   :  { %188 = vperm.xlu2 %286, %v180_v20  }
  0x63   :  { %v209_v38 = vpop.permute.xlu2 %208 }
  0x6b   :  { %v157_v60 = vpop.permute.xlu2 %156 }
  0x73   :  { %v199_v13 = vpop.permute.xlu2 %198 }
  0x79   :  { %v172_v30 = vpop.permute.xlu0 %171 }
  0x7a   :  { %v214_v33 = vpop.permute.xlu1 %213 }
  0x81   :  { %v167_v52 = vpop.permute.xlu0 %166 }
  0x82   :  { %v400_v21 = vpop.f32.mrf.mxu0  ;;  %v162_v57 = vpop.permute.xlu1 %161 }
  0x83   :  { %v84_v26 = vmul.f32 %v400_v21, %v400_v21 }
  0x85   :  { %v90_v34 = vmul.f32 %v84_v26, %v400_v21 }
  0x87   :  { %v96_v44 = vmul.f32 0.044715, %v90_v34 }
  0x89   :  { %v402_v22 = vpop.f32.mrf.mxu2  ;;  %v406_v24 = vpop.f32.mrf.mxu3  ;;  %v102_v53 = vadd.f32 %v96_v44, %v400_v21 }
  0x8a   :  { %v86_v23 = vmul.f32 %v402_v22, %v402_v22  ;;  %v408_v25 = vpop.f32.mrf.mxu0  ;;  %v88_v27 = vmul.f32 %v406_v24, %v406_v24  ;;  %v204_v3 = vpop.permute.xlu0 %203  ;;  %v178_v15 = vmul.f32 %v167_v52, %v406_v24 }
  0x8b   :  { %v85_v28 = vmul.f32 %v408_v25, %v408_v25  ;;  %v108_v62 = vmul.f32 0.7978846, %v102_v53  ;;  %v152_v6 = vpop.permute.xlu1 %151 }
  0x8c   :  { %v92_v29 = vmul.f32 %v86_v23, %v402_v22  ;;  %v94_v31 = vmul.f32 %v88_v27, %v406_v24  ;;  %v175_v34 = vmul.f32 %v152_v6, %v408_v25 }
  0x8d   :  { %v91_v32 = vmul.f32 %v85_v28, %v408_v25  ;;  %v176_v28 = vmul.f32 %v157_v60, %v402_v22 }
  0x8e   :  { %v98_v35 = vmul.f32 0.044715, %v92_v29  ;;  %v100_v36 = vmul.f32 0.044715, %v94_v31 }
  0x8f   :  { %v97_v37 = vmul.f32 0.044715, %v91_v32 }
  0x90   :  { %v106_v39 = vadd.f32 %v100_v36, %v406_v24  ;;  %v104_v45 = vadd.f32 %v98_v35, %v402_v22 }
  0x91   :  { %v75_v40 = vpop.f32.mrf.mxu2  ;;  %v103_v41 = vadd.f32 %v97_v37, %v408_v25  ;;  %v81_v43 = vpop.f32.mrf.mxu3 }
  0x92   :  { %v87_v42 = vmul.f32 %v75_v40, %v75_v40  ;;  %v89_v46 = vmul.f32 %v81_v43, %v81_v43  ;;  %v112_v47 = vmul.f32 0.7978846, %v106_v39  ;;  %v110_v55 = vmul.f32 0.7978846, %v104_v45  ;;  %v147_v35 = vpop.permute.xlu0 %146 }
  0x93   :  { %v109_v50 = vmul.f32 0.7978846, %v103_v41  ;;  %v179_v7 = vmul.f32 %v172_v30, %v81_v43  ;;  %v177_v19 = vmul.f32 %v162_v57, %v75_v40  ;;  %v220_v30 = vadd.f32 %v209_v38, %v178_v15  ;;  %v194_v41 = vpop.permute.xlu1 %193  ;;  %v189_v38 = vpop.permute.xlu2 %188 }
  0x94   :  { %v93_v48 = vmul.f32 %v87_v42, %v75_v40  ;;  %v95_v49 = vmul.f32 %v89_v46, %v81_v43  ;;  %287 = vtanh.f32 %v112_v47  ;;  %v218_v42 = vadd.f32 %v199_v13, %v176_v28 }
  0x95   :  { %289 = vtanh.f32 %v109_v50  ;;  %v221_v18 = vadd.f32 %v214_v33, %v179_v7  ;;  %v219_v37 = vadd.f32 %v204_v3, %v177_v19 }
  0x96   :  { %v99_v51 = vmul.f32 0.044715, %v93_v48  ;;  %v101_v54 = vmul.f32 0.044715, %v95_v49  ;;  %291 = vtanh.f32 %v110_v55  ;;  %v228_v49 = vld [vmem:[%s441_s3] sm:$0x1] }
  0x98   :  { %v105_v56 = vadd.f32 %v99_v51, %v75_v40  ;;  %v107_v58 = vadd.f32 %v101_v54, %v81_v43 }
  0x9a   :  { %v111_v59 = vmul.f32 0.7978846, %v105_v56  ;;  %v113_v61 = vmul.f32 0.7978846, %v107_v58  ;;  %v288_v63 = vpop.eup %287 }
  0x9b   :  { %v290_v0 = vpop.eup %289  ;;  %v124_v1 = vadd.f32 1.0, %v288_v63 }
  0x9c   :  { %293 = vtanh.f32 %v111_v59  ;;  %v292_v2 = vpop.eup %291  ;;  %v121_v17 = vadd.f32 1.0, %v290_v0 }
  0x9d   :  { %295 = vtanh.f32 %v113_v61  ;;  %v130_v10 = vmul.f32 0.5, %v124_v1  ;;  %v122_v11 = vadd.f32 1.0, %v292_v2 }
  0x9e   :  { %297 = vtanh.f32 %v108_v62  ;;  %v127_v32 = vmul.f32 0.5, %v121_v17 }
  0x9f   :  { %v136_v23 = vmul.f32 %v130_v10, %v406_v24  ;;  %v128_v26 = vmul.f32 0.5, %v122_v11  ;;  %v174_v24 = vmul.f32 %v147_v35, %v400_v21 }
  0xa0   :  { %v133_v44 = vmul.f32 %v127_v32, %v408_v25 }
  0xa1   :  { %v226_v36 = vmul.f32 %v220_v30, %v136_v23  ;;  %v134_v33 = vmul.f32 %v128_v26, %v402_v22  ;;  %v216_v47 = vadd.f32 %v189_v38, %v174_v24 }
  0xa2   :  { %v294_v4 = vpop.eup %293 }
  0xa3   :  { %v296_v5 = vpop.eup %295  ;;  %v123_v8 = vadd.f32 1.0, %v294_v4  ;;  %v224_v45 = vmul.f32 %v218_v42, %v134_v33 }
  0xa4   :  { %v125_v9 = vadd.f32 1.0, %v296_v5  ;;  %v298_v12 = vpop.eup %297 }
  0xa5   :  { %v129_v16 = vmul.f32 0.5, %v123_v8  ;;  %v120_v27 = vadd.f32 1.0, %v298_v12 }
  0xa6   :  { %v131_v14 = vmul.f32 0.5, %v125_v9 }
  0xa7   :  { %v135_v31 = vmul.f32 %v129_v16, %v75_v40  ;;  %v126_v39 = vmul.f32 0.5, %v120_v27  ;;  %v217_v40 = vadd.f32 %v194_v41, %v175_v34 }
  0xa8   :  { %v137_v20 = vmul.f32 %v131_v14, %v81_v43 }
  0xa9   :  { %v225_v43 = vmul.f32 %v219_v37, %v135_v31  ;;  %v132_v46 = vmul.f32 %v126_v39, %v400_v21  ;;  %v223_v48 = vmul.f32 %v217_v40, %v133_v44 }
  0xaa   :  { %v227_v29 = vmul.f32 %v221_v18, %v137_v20 }
  0xab   :  { %v222_v22 = vmul.f32 %v216_v47, %v132_v46 }
  0xac   :  { %243 = vmatpush.msra.mxu1 %v227_v29 }
  0xae   :  { %244 = vmatpush.msra.mxu1 %v226_v36 }
  0xb0   :  { %245 = vmatpush.msra.mxu1 %v225_v43 }
  0xb2   :  { %246 = vmatpush.msra.mxu1 %v224_v45 }
  0xb4   :  { %247 = vmatpush.msra.mxu1 %v223_v48 }
  0xb6   :  { %248 = vmatpush.msra.mxu1 %v222_v22 }
  0xb7   :  { %277 = vmatmul.msk.f32.vlgmr.msra.gmra.mxu1 %vm229_vm2, %v228_v49 }
 0x134   :  { %v250_v21 = vpop.f32.mrf.mxu1 }
 0x135   :  { %253 = vst [vmem:[#allocation2] sm:$0x1] %v250_v21 }
 0x136   :  { %264 = dma.vmem_to_hbm [thread:$0]  %s260_s17, 16, %s262_s20, [#allocation3]  }
 0x137   :  { %323 = dma.done.wait [#allocation3], 16  }
 0x138   :  { %324 = vsyncadd [#allocation3], 4294967280 }
 0x139   :  { %269 = vsyncpa [#allocation3], 1 }

</bundles_post_ra>
